<compile_context>
chip_gen: v7x
topology: tpu7x:2x2x1
jax: 0.10.0
libtpu: 0.0.40
codegen_flags: <defaults>
</compile_context>

<pallas_src>
import functools

import jax
import jax.numpy as jnp
from jax.experimental import pallas as pl
from jax.experimental.pallas import tpu as pltpu


def _round_up(x, m):
    return pl.cdiv(x, m) * m


def _qnet_kernel(x_ref, w1_ref, b1_ref, w2_ref, b2_ref, w3_ref, b3_ref, o_ref):
    # Hot path: 3 MXU matmuls (bf16 inputs, f32 accumulation) + 2 ReLUs on the
    # batch tile resident in VMEM.  x arrives as f32 and is cast here (cheaper
    # than a separate wrapper pass over x in HBM).
    x = x_ref[...].astype(jnp.bfloat16)                                 # (tb, in)
    h1 = jnp.dot(x, w1_ref[...], preferred_element_type=jnp.float32) + b1_ref[...]
    h1 = jnp.maximum(h1, 0.0).astype(jnp.bfloat16)                      # (tb, 128)
    h2 = jnp.dot(h1, w2_ref[...], preferred_element_type=jnp.float32) + b2_ref[...]
    h2 = jnp.maximum(h2, 0.0).astype(jnp.bfloat16)                      # (tb, 128)
    out = jnp.dot(h2, w3_ref[...], preferred_element_type=jnp.float32) + b3_ref[...]
    o_ref[...] = out.astype(o_ref.dtype)                                # (tb, out_dim)


@functools.partial(jax.jit, static_argnames=("batch_tile",))
def qnetwork_forward(x, params, *, batch_tile=None):
    """x: [B, input_dim] f32. params: prepared dict (bf16 weights [in,out], f32 biases [1,out])."""
    B, in_dim = x.shape
    hidden = params["w1"].shape[1]
    out_dim = params["w3"].shape[1]

    # ---- tiling choices -----------------------------------------------------
    MAX_TILE = 2048
    b_ceil8 = _round_up(B, 8)
    if batch_tile is not None:
        tb = _round_up(batch_tile, 8)
    else:
        # >= 2 balanced grid steps whenever B allows (so the "parallel" batch
        # axis can split across v7x's 2 TensorCores), capped at MAX_TILE to
        # amortize the ~0.35us/step overhead while keeping VMEM tiny.
        tb = max(8, min(MAX_TILE, _round_up(pl.cdiv(b_ceil8, 2), 8)))
    B_pad = _round_up(B, tb)                     # ragged batch -> zero pad rows

    # Per-step VMEM footprint with lane-padded layouts: double-buffered x/out
    # tiles, single-buffered weights (Buffered(1)), f32 activation scratch.
    lane = 128
    vmem_est = (
        2 * tb * _round_up(in_dim, lane) * 4                       # x tiles (f32, lane-padded)
        + 2 * tb * _round_up(out_dim, lane) * 4                    # out tiles (f32, lane-padded)
        + (_round_up(in_dim, 16) + _round_up(hidden, 16)) * _round_up(hidden, lane) * 2   # w1,w2 bf16
        + _round_up(hidden, 16) * _round_up(out_dim, lane) * 2     # w3 bf16
        + 3 * 8 * lane * 4                                         # biases (f32)
        + 3 * tb * _round_up(hidden, lane) * 4                     # h1/h2 intermediates
    )
    assert vmem_est < 24 * 1024 * 1024, (
        f"batch_tile={tb} would use ~{vmem_est >> 20} MiB VMEM; pick a smaller tile"
    )

    # Only remaining wrapper-side pass over x: row padding when B % tb != 0.
    xp = x if B_pad == B else jnp.pad(x, ((0, B_pad - B), (0, 0)))

    grid = (B_pad // tb,)

    def batch_map(i):
        return (i, 0)

    def rep_map(i):
        return (0, 0)

    resident = pl.Buffered(1)   # constant index_map -> no re-DMA; one buffer is enough

    flops = 2 * B_pad * (in_dim * hidden + hidden * hidden + hidden * out_dim)
    bytes_accessed = (
        B_pad * in_dim * 4                                          # x (f32 read)
        + B_pad * out_dim * 4                                       # out (f32 write)
        + (in_dim * hidden + hidden * hidden + hidden * out_dim) * 2  # weights (bf16)
        + (2 * hidden + out_dim) * 4                                # biases (f32)
    )

    out = pl.pallas_call(
        _qnet_kernel,
        out_shape=jax.ShapeDtypeStruct((B_pad, out_dim), x.dtype),
        grid_spec=pltpu.PrefetchScalarGridSpec(
            num_scalar_prefetch=0,
            grid=grid,
            in_specs=[
                pl.BlockSpec((tb, in_dim), batch_map),                               # x tile (f32)
                pl.BlockSpec((in_dim, hidden), rep_map, pipeline_mode=resident),     # w1 (bf16)
                pl.BlockSpec((1, hidden), rep_map, pipeline_mode=resident),          # b1 (f32)
                pl.BlockSpec((hidden, hidden), rep_map, pipeline_mode=resident),     # w2 (bf16)
                pl.BlockSpec((1, hidden), rep_map, pipeline_mode=resident),          # b2 (f32)
                pl.BlockSpec((hidden, out_dim), rep_map, pipeline_mode=resident),    # w3 (bf16, unpadded)
                pl.BlockSpec((1, out_dim), rep_map, pipeline_mode=resident),         # b3 (f32, unpadded)
            ],
            out_specs=pl.BlockSpec((tb, out_dim), batch_map),
        ),
        compiler_params=pltpu.CompilerParams(
            dimension_semantics=("parallel",),               # megacore split on v7x
            vmem_limit_bytes=32 * 1024 * 1024,               # safe on v5e/v6e/v7x
        ),
        cost_estimate=pl.CostEstimate(
            flops=flops, transcendentals=0, bytes_accessed=bytes_accessed
        ),
    )(xp, params["w1"], params["b1"], params["w2"], params["b2"],
      params["w3"], params["b3"])

    return out if B_pad == B else out[:B]


def prepare_qnetwork_params(params):
    """One-time (outside the per-call jit) conversion: bf16 weights, f32 biases."""
    return {
        "w1": params["w1"].astype(jnp.bfloat16),
        "b1": params["b1"].astype(jnp.float32),
        "w2": params["w2"].astype(jnp.bfloat16),
        "b2": params["b2"].astype(jnp.float32),
        "w3": params["w3"].astype(jnp.bfloat16),
        "b3": params["b3"].astype(jnp.float32),
    }


def init_qnetwork_params(key, input_dim, output_dim, hidden=128):
    """Deterministic init mimicking PyTorch nn.Linear default U(-1/sqrt(fan_in), 1/sqrt(fan_in))."""
    k1, k2, k3, k4, k5, k6 = jax.random.split(key, 6)

    def lin(kw, kb, fan_in, fan_out):
        bound = 1.0 / jnp.sqrt(fan_in)
        w = jax.random.uniform(kw, (fan_in, fan_out), jnp.float32, -bound, bound)
        b = jax.random.uniform(kb, (1, fan_out), jnp.float32, -bound, bound)
        return w, b

    w1, b1 = lin(k1, k2, input_dim, hidden)
    w2, b2 = lin(k3, k4, hidden, hidden)
    w3, b3 = lin(k5, k6, hidden, output_dim)
    return {"w1": w1, "b1": b1, "w2": w2, "b2": b2, "w3": w3, "b3": b3}


def qnetwork_ref(x, p):
    h1 = jnp.maximum(x @ p["w1"] + p["b1"], 0.0)
    h2 = jnp.maximum(h1 @ p["w2"] + p["b2"], 0.0)
    return h2 @ p["w3"] + p["b3"]


if __name__ == "__main__":
    key = jax.random.PRNGKey(0)
    kx, kx2, kp = jax.random.split(key, 3)

    input_dim, output_dim = 16, 8
    params = init_qnetwork_params(kp, input_dim, output_dim)
    fwd_params = prepare_qnetwork_params(params)   # bf16 cast once, outside the hot loop

    # Case 1: explicit small tile -> multi-step grid (exercises pipelining /
    # the parallel batch axis).
    B1 = 32
    x1 = jax.random.normal(kx, (B1, input_dim), jnp.float32)
    out1 = jax.block_until_ready(qnetwork_forward(x1, fwd_params, batch_tile=8))
    ref1 = qnetwork_ref(x1, params)
    assert out1.shape == (B1, output_dim)
    # bf16 weights/activations with f32 accumulation -> loosened tolerance.
    assert jnp.allclose(out1, ref1, atol=5e-2, rtol=5e-2), float(jnp.max(jnp.abs(out1 - ref1)))

    # Case 2: default tile with a ragged batch (exercises batch padding and
    # the auto >=2-step grid split).
    B2 = 10
    x2 = jax.random.normal(kx2, (B2, input_dim), jnp.float32)
    out2 = jax.block_until_ready(qnetwork_forward(x2, fwd_params))
    ref2 = qnetwork_ref(x2, params)
    assert out2.shape == (B2, output_dim)
    assert jnp.allclose(out2, ref2, atol=5e-2, rtol=5e-2), float(jnp.max(jnp.abs(out2 - ref2)))

    print("KERNEL_OK")
</pallas_src>

<mosaic_0001>
module attributes {stable_mosaic.version = 11 : i64} {
  func.func @_qnet_kernel(%arg0: i32, %arg1: memref<8x16xf32, #tpu.memory_space<vmem>>, %arg2: memref<16x128xbf16, #tpu.memory_space<vmem>>, %arg3: memref<1x128xf32, #tpu.memory_space<vmem>>, %arg4: memref<128x128xbf16, #tpu.memory_space<vmem>>, %arg5: memref<1x128xf32, #tpu.memory_space<vmem>>, %arg6: memref<128x8xbf16, #tpu.memory_space<vmem>>, %arg7: memref<1x8xf32, #tpu.memory_space<vmem>>, %arg8: memref<8x8xf32, #tpu.memory_space<vmem>>) attributes {dimension_semantics = [#tpu.dimension_semantics<parallel>], iteration_bounds = array<i64: 4>, scalar_prefetch = 0 : i64, scratch_operands = 0 : i64, tpu.core_type = #tpu.core_type<tc>, window_params = [{transform_indices = @transform_0, window_bounds = array<i64: 8, 16>}, {pipeline_mode = #tpu.pipeline_mode<synchronous>, transform_indices = @transform_1, window_bounds = array<i64: 16, 128>}, {pipeline_mode = #tpu.pipeline_mode<synchronous>, transform_indices = @transform_2, window_bounds = array<i64: 1, 128>}, {pipeline_mode = #tpu.pipeline_mode<synchronous>, transform_indices = @transform_3, window_bounds = array<i64: 128, 128>}, {pipeline_mode = #tpu.pipeline_mode<synchronous>, transform_indices = @transform_4, window_bounds = array<i64: 1, 128>}, {pipeline_mode = #tpu.pipeline_mode<synchronous>, transform_indices = @transform_5, window_bounds = array<i64: 128, 8>}, {pipeline_mode = #tpu.pipeline_mode<synchronous>, transform_indices = @transform_6, window_bounds = array<i64: 1, 8>}, {transform_indices = @transform_7, window_bounds = array<i64: 8, 8>}]} {
    %c0 = arith.constant 0 : index
    %c0_0 = arith.constant 0 : index
    %0 = vector.load %arg1[%c0, %c0_0] : memref<8x16xf32, #tpu.memory_space<vmem>>, vector<8x16xf32>
    %1 = arith.truncf %0 : vector<8x16xf32> to vector<8x16xbf16>
    %c0_1 = arith.constant 0 : index
    %c0_2 = arith.constant 0 : index
    %2 = vector.load %arg2[%c0_1, %c0_2] : memref<16x128xbf16, #tpu.memory_space<vmem>>, vector<16x128xbf16>
    %cst = arith.constant dense<0.000000e+00> : vector<8x128xf32>
    %3 = tpu.matmul %1, %2, %cst {dimension_numbers = #tpu.dot_dimension_numbers<[1], [0], [0], [1], [0, 0, 1, 1], [], []>} : vector<8x16xbf16>, vector<16x128xbf16>, vector<8x128xf32> -> vector<8x128xf32>
    %c0_3 = arith.constant 0 : index
    %c0_4 = arith.constant 0 : index
    %4 = vector.load %arg3[%c0_3, %c0_4] : memref<1x128xf32, #tpu.memory_space<vmem>>, vector<1x128xf32>
    %5 = vector.broadcast %4 : vector<1x128xf32> to vector<8x128xf32>
    %6 = arith.addf %3, %5 : vector<8x128xf32>
    %cst_5 = arith.constant 0.000000e+00 : f32
    %7 = vector.broadcast %cst_5 : f32 to vector<8x128xf32>
    %8 = arith.maximumf %6, %7 : vector<8x128xf32>
    %9 = arith.truncf %8 : vector<8x128xf32> to vector<8x128xbf16>
    %c0_6 = arith.constant 0 : index
    %c0_7 = arith.constant 0 : index
    %10 = vector.load %arg4[%c0_6, %c0_7] : memref<128x128xbf16, #tpu.memory_space<vmem>>, vector<128x128xbf16>
    %cst_8 = arith.constant dense<0.000000e+00> : vector<8x128xf32>
    %11 = tpu.matmul %9, %10, %cst_8 {dimension_numbers = #tpu.dot_dimension_numbers<[1], [0], [0], [1], [0, 0, 1, 1], [], []>} : vector<8x128xbf16>, vector<128x128xbf16>, vector<8x128xf32> -> vector<8x128xf32>
    %c0_9 = arith.constant 0 : index
    %c0_10 = arith.constant 0 : index
    %12 = vector.load %arg5[%c0_9, %c0_10] : memref<1x128xf32, #tpu.memory_space<vmem>>, vector<1x128xf32>
    %13 = vector.broadcast %12 : vector<1x128xf32> to vector<8x128xf32>
    %14 = arith.addf %11, %13 : vector<8x128xf32>
    %cst_11 = arith.constant 0.000000e+00 : f32
    %15 = vector.broadcast %cst_11 : f32 to vector<8x128xf32>
    %16 = arith.maximumf %14, %15 : vector<8x128xf32>
    %17 = arith.truncf %16 : vector<8x128xf32> to vector<8x128xbf16>
    %c0_12 = arith.constant 0 : index
    %c0_13 = arith.constant 0 : index
    %18 = vector.load %arg6[%c0_12, %c0_13] : memref<128x8xbf16, #tpu.memory_space<vmem>>, vector<128x8xbf16>
    %cst_14 = arith.constant dense<0.000000e+00> : vector<8x8xf32>
    %19 = tpu.matmul %17, %18, %cst_14 {dimension_numbers = #tpu.dot_dimension_numbers<[1], [0], [0], [1], [0, 0, 1, 1], [], []>} : vector<8x128xbf16>, vector<128x8xbf16>, vector<8x8xf32> -> vector<8x8xf32>
    %c0_15 = arith.constant 0 : index
    %c0_16 = arith.constant 0 : index
    %20 = vector.load %arg7[%c0_15, %c0_16] : memref<1x8xf32, #tpu.memory_space<vmem>>, vector<1x8xf32>
    %21 = vector.broadcast %20 : vector<1x8xf32> to vector<8x8xf32>
    %22 = arith.addf %19, %21 : vector<8x8xf32>
    %c0_17 = arith.constant 0 : index
    %c0_18 = arith.constant 0 : index
    %23 = vector.load %arg8[%c0_17, %c0_18] : memref<8x8xf32, #tpu.memory_space<vmem>>, vector<8x8xf32>
    tpu.vector_store %arg8[%c0_17, %c0_18], %22 {strides = array<i32>} : memref<8x8xf32, #tpu.memory_space<vmem>>, vector<8x8xf32>,
    return
  }
  func.func @transform_0(%arg0: i32) -> (i32, i32) {
    %c0_i32 = arith.constant 0 : i32
    %c0_i32_0 = arith.constant 0 : i32
    return %arg0, %c0_i32 : i32, i32
  }
  func.func @transform_1(%arg0: i32) -> (i32, i32) {
    %c0_i32 = arith.constant 0 : i32
    %c0_i32_0 = arith.constant 0 : i32
    %c0_i32_1 = arith.constant 0 : i32
    return %c0_i32, %c0_i32_0 : i32, i32
  }
  func.func @transform_2(%arg0: i32) -> (i32, i32) {
    %c0_i32 = arith.constant 0 : i32
    %c0_i32_0 = arith.constant 0 : i32
    %c0_i32_1 = arith.constant 0 : i32
    return %c0_i32, %c0_i32_0 : i32, i32
  }
  func.func @transform_3(%arg0: i32) -> (i32, i32) {
    %c0_i32 = arith.constant 0 : i32
    %c0_i32_0 = arith.constant 0 : i32
    %c0_i32_1 = arith.constant 0 : i32
    return %c0_i32, %c0_i32_0 : i32, i32
  }
  func.func @transform_4(%arg0: i32) -> (i32, i32) {
    %c0_i32 = arith.constant 0 : i32
    %c0_i32_0 = arith.constant 0 : i32
    %c0_i32_1 = arith.constant 0 : i32
    return %c0_i32, %c0_i32_0 : i32, i32
  }
  func.func @transform_5(%arg0: i32) -> (i32, i32) {
    %c0_i32 = arith.constant 0 : i32
    %c0_i32_0 = arith.constant 0 : i32
    %c0_i32_1 = arith.constant 0 : i32
    return %c0_i32, %c0_i32_0 : i32, i32
  }
  func.func @transform_6(%arg0: i32) -> (i32, i32) {
    %c0_i32 = arith.constant 0 : i32
    %c0_i32_0 = arith.constant 0 : i32
    %c0_i32_1 = arith.constant 0 : i32
    return %c0_i32, %c0_i32_0 : i32, i32
  }
  func.func @transform_7(%arg0: i32) -> (i32, i32) {
    %c0_i32 = arith.constant 0 : i32
    %c0_i32_0 = arith.constant 0 : i32
    return %arg0, %c0_i32 : i32, i32
  }
}

</mosaic_0001>

<bundles_post_ra>
// kernel: qnetwork_forward.1
= control target key start
LH: loop header
LB: loop body
LE: loop exit
PB: predicated region body
PF: predicated region fallthrough
CT: control target
= control target key end

     0   :  { %s790_s24 = smov 0   ;;  %s897_s0 = inlined_call_operand.vmem [shape: f32[32,16], index: 0, kind: input, shape index: {}]   ;;  %s898_s1 = inlined_call_operand.vmem [shape: bf16[16,128], index: 1, kind: input, shape index: {}]   ;;  %s899_s2 = inlined_call_operand.vmem [shape: f32[1,128], index: 2, kind: input, shape index: {}]   ;;  %s900_s3 = inlined_call_operand.vmem [shape: bf16[128,128], index: 3, kind: input, shape index: {}]   ;;  %s901_s4 = inlined_call_operand.vmem [shape: f32[1,128], index: 4, kind: input, shape index: {}]   ;;  %s902_s5 = inlined_call_operand.vmem [shape: bf16[128,8], index: 5, kind: input, shape index: {}]   ;;  %s903_s6 = inlined_call_operand.vmem [shape: f32[1,8], index: 6, kind: input, shape index: {}]   ;;  %s904_s7 = inlined_call_operand.vmem [shape: f32[32,8], index: 7, kind: output, shape index: {}]  }
   0x1 LB: > { %s617_s25 = sadd.s32 4294967295, %s746_s24   ;;  %p621_p0 = scmp.ge.s32.totalorder %s746_s24, 1  ;;  %s746_s24 = sphi %s790_s24, %s17_s24  }
   0x2   : > { %p236_p1 = scmp.lt.s32.totalorder %s746_s24, 5 }
   0x4   : > { %p237_p2 = pnand %p621_p0, %p236_p1 }
   0x5   : > { %v723_v0 = vld [vmem:[%s898_s1] sm:$0xff] (!%p237_p2)   ;;  %v748_v1 = vmov (!%p237_p2), 0.0   ;;  %p266_p3 = scmp.lt.s32.totalorder (!%p237_p2), %s617_s25, 3  ;;  %vm749_vm0 = vmmov (!%p237_p2), 0   ;;  %v725_v3 = vld [vmem:[%s900_s3 + $0x8] sm:$0xff] (!%p237_p2)   ;;  %vm292_vm1 = vcmask (!%p237_p2), 130048  }
   0x6   : > { %240 = sbr.rel (%p237_p2) target bundleno = 670 (0x29e), region = 48  ;;  %667 = vmatprep.subr.bf16.mxu0 (!%p237_p2), %v748_v1  ;;  %673 = vmatprep.subr.bf16.mxu1 (!%p237_p2), %v748_v1  ;;  %v724_v2 = vld [vmem:[%s900_s3] sm:$0xff] (!%p237_p2)   ;;  %v726_v5 = vld [vmem:[%s900_s3 + $0x10] sm:$0xff] (!%p237_p2)   ;;  %v727_v7 = vld [vmem:[%s900_s3 + $0x18] sm:$0xff] (!%p237_p2)   ;;  %vm562_vm2 = vcmask (!%p237_p2), 64512  }
   0x7   : > { %668 = vmatpush3.bf16.msra.mxu0 (!%p237_p2), %v723_v0  ;;  %669 = vmatprep.mubr.msk.bf16.mxu0 (!%p237_p2), %vm749_vm0, %v748_v1  ;;  %v728_v8 = vld [vmem:[%s900_s3 + $0x20] sm:$0xff] (!%p237_p2)   ;;  %v729_v9 = vld [vmem:[%s900_s3 + $0x28] sm:$0xff] (!%p237_p2)   ;;  %v730_v10 = vld [vmem:[%s900_s3 + $0x30] sm:$0xff] (!%p237_p2)  }
   0x8   : > { %674 = vmatpush3.bf16.msra.mxu1 (!%p237_p2), %v724_v2  ;;  %689 = vmatprep.mubr.msk.bf16.mxu1 (!%p237_p2), %vm749_vm0, %v748_v1  ;;  %v731_v11 = vld [vmem:[%s900_s3 + $0x38] sm:$0xff] (!%p237_p2)   ;;  %v732_v12 = vld [vmem:[%s902_s5] sm:$0xff] (!%p237_p2)   ;;  %v733_v13 = vld [vmem:[%s902_s5 + $0x8] sm:$0xff] (!%p237_p2)  }
   0x9   : > { %675 = vmatprep.subr.bf16.mxu1 (!%p237_p2), %v748_v1  ;;  %693 = vmatprep.subr.bf16.mxu0 (!%p237_p2), %v748_v1  ;;  %v734_v14 = vld [vmem:[%s902_s5 + $0x10] sm:$0xff] (!%p237_p2)   ;;  %v735_v15 = vld [vmem:[%s902_s5 + $0x18] sm:$0xff] (!%p237_p2)   ;;  %v736_v16 = vld [vmem:[%s902_s5 + $0x20] sm:$0xff] (!%p237_p2)  }
   0xa   : > { %v737_v17 = vld [vmem:[%s902_s5 + $0x28] sm:$0xff] (!%p237_p2)   ;;  %v624_v18 = vld [vmem:[%s899_s2] ss:$0 sm:$0xff] (!%p237_p2)  ;;  %v738_v26 = vld [vmem:[%s902_s5 + $0x30] sm:$0xff] (!%p237_p2)  }
   0xb   : > { %v739_v27 = vld [vmem:[%s902_s5 + $0x38] sm:$0xff] (!%p237_p2)   ;;  %v627_v28 = vld [vmem:[%s901_s4] ss:$0 sm:$0xff] (!%p237_p2) }
   0xc   : > { %676 = vmatpush3.bf16.msra.mxu1 (!%p237_p2), %v725_v3  ;;  %v636_v36 = vld [vmem:[%s903_s6] ss:$0 sm:$0xff] (!%p237_p2) }
   0xd   : > { %s906_s25 = smov (!%p266_p3, %s617_s25), 3  ;;  %677 = vmatprep.subr.bf16.mxu1 %v748_v1 }
   0xe   : > { %s622_s9 = sshll.u32 %s906_s25, 3 }
   0xf   : > { %s269_s12 = scalar_lea.vmem %s897_s0, %s622_s9  ;;  %s273_s8 = scalar_lea.vmem %s904_s7, %s622_s9 }
  0x10   : > { %v275_v4 = vld [vmem:[%s269_s12] sm:$0xff]  ;;  %678 = vmatpush3.bf16.msra.mxu1 %v726_v5 }
  0x11   : > { %v276_v6 = vpack.c.bf16 %v275_v4, %v275_v4  ;;  %679 = vmatprep.subr.bf16.mxu1 %v748_v1 }
  0x13   : > { %670 = vmatmul.mubr.msk.bf16.vlgmr.msra.gmra.mrb[0].mxu0 %vm292_vm1, %v276_v6 }
  0x14   : > { %709 = vmatprep.mubr.msk.bf16.mxu0 %vm749_vm0, %v748_v1  ;;  %680 = vmatpush3.bf16.msra.mxu1 %v727_v7 }
  0x15   : > { %681 = vmatprep.subr.bf16.mxu1 %v748_v1  ;;  %694 = vmatpush3.bf16.msra.mxu0 %v732_v12 }
  0x16   : > { %695 = vmatprep.subr.bf16.mxu0 %v748_v1 }
  0x18   : > { %682 = vmatpush3.bf16.msra.mxu1 %v728_v8 }
  0x19   : > { %683 = vmatprep.subr.bf16.mxu1 %v748_v1  ;;  %696 = vmatpush3.bf16.msra.mxu0 %v733_v13 }
  0x1a   : > { %697 = vmatprep.subr.bf16.mxu0 %v748_v1 }
  0x1c   : > { %684 = vmatpush3.bf16.msra.mxu1 %v729_v9 }
  0x1d   : > { %685 = vmatprep.subr.bf16.mxu1 %v748_v1  ;;  %698 = vmatpush3.bf16.msra.mxu0 %v734_v14 }
  0x1e   : > { %699 = vmatprep.subr.bf16.mxu0 %v748_v1 }
  0x20   : > { %686 = vmatpush3.bf16.msra.mxu1 %v730_v10 }
  0x21   : > { %687 = vmatprep.subr.bf16.mxu1 %v748_v1  ;;  %700 = vmatpush3.bf16.msra.mxu0 %v735_v15 }
  0x22   : > { %701 = vmatprep.subr.bf16.mxu0 %v748_v1 }
  0x24   : > { %688 = vmatpush3.bf16.msra.mxu1 %v731_v11 }
  0x25   : > { %702 = vmatpush3.bf16.msra.mxu0 %v736_v16 }
  0x26   : > { %703 = vmatprep.subr.bf16.mxu0 %v748_v1 }
  0x29   : > { %704 = vmatpush3.bf16.msra.mxu0 %v737_v17 }
  0x2a   : > { %705 = vmatprep.subr.bf16.mxu0 %v748_v1 }
  0x2d   : > { %706 = vmatpush3.bf16.msra.mxu0 %v738_v26 }
  0x2e   : > { %707 = vmatprep.subr.bf16.mxu0 %v748_v1 }
  0x31   : > { %708 = vmatpush3.bf16.msra.mxu0 %v739_v27 }
  0xe6   : > { %v330_v19 = vpop.f32.mrb[0].mxu0 }
  0xe7   : > { %v331_v20 = vadd.f32 %v624_v18, %v330_v19  ;;  %v671_v21 = vpop.f32.mrb[1].mxu0 }
  0xe8   : > { %v333_v22 = vpop.f32.mrb[2].mxu0 }
  0xe9   : > { %v336_v23 = vmax.f32 %v331_v20, 0.0  ;;  %v672_v24 = vpop.f32.mrb[3].mxu0 }
  0xeb   : > { %v337_v25 = vpack.c.bf16 %v336_v23, %v336_v23 }
  0xed   : > { %690 = vmatmul.mubr.bf16.vlgmr.msra.gmra.mrb[0].mxu1 %v337_v25 }
 0x1c0   : > { %v443_v29 = vpop.f32.mrb[0].mxu1 }
 0x1c1   : > { %v444_v30 = vadd.f32 %v627_v28, %v443_v29  ;;  %v691_v31 = vpop.f32.mrb[1].mxu1 }
 0x1c2   : > { %v446_v32 = vpop.f32.mrb[2].mxu1 }
 0x1c3   : > { %v449_v33 = vmax.f32 %v444_v30, 0.0  ;;  %v692_v34 = vpop.f32.mrb[3].mxu1 }
 0x1c5   : > { %v450_v35 = vpack.c.bf16 %v449_v33, %v449_v33 }
 0x1c7   : > { %710 = vmatmul.mubr.bf16.vlgmr.msra.gmra.mrb[4].mxu0 %v450_v35 }
 0x29a   : > { %v556_v37 = vpop.f32.mrb[4].mxu0 }
 0x29b   : > { %v557_v38 = vadd.f32 %v636_v36, %v556_v37  ;;  %v711_v39 = vpop.f32.mrb[5].mxu0 }
 0x29c   : > { %v559_v40 = vpop.f32.mrb[6].mxu0 }
 0x29d   : > { %563 = vst.msk [vmem:[%s273_s8] sm:$0xff] %vm562_vm2, %v557_v38  ;;  %v712_v41 = vpop.f32.mrb[7].mxu0 }
 0x29e PF: > { %s17_s24 = sadd.s32 1, %s746_s24  }
 0x29f   : > { %p14_p4 = scmp.ge.s32.totalorder %s17_s24, 6  }
 0x2a1   :  { %16 = sbr.rel (!%p14_p4) target bundleno = 1 (0x1), region = 78 }

</bundles_post_ra>
